<compile_context>
chip_gen: v7x
topology: tpu7x:2x2x1
jax: 0.10.0
libtpu: 0.0.40
codegen_flags: <defaults>
</compile_context>

<pallas_src>
import functools
import math

import jax
import jax.numpy as jnp
from jax.experimental import pallas as pl
from jax.experimental.pallas import tpu as pltpu


# --------------------------------------------------------------------------
# Kernels
# --------------------------------------------------------------------------
def _gwl_flat_kernel(x_ref, wseg_ref, b_ref, o_ref, *, precision):
    # x_ref: (TB, C*D)  wseg_ref: (C*D, Cp)  b_ref: (1, Cp) f32  o_ref: (TB, Cp)
    acc = jnp.dot(
        x_ref[...],
        wseg_ref[...],
        preferred_element_type=jnp.float32,
        precision=precision,
    )
    o_ref[...] = (acc + b_ref[...]).astype(o_ref.dtype)


def _gwl_direct_kernel(x_ref, w_ref, b_ref, o_ref):
    # x_ref: (TB, C, D)  w_ref: (1, C, D)  b_ref: (1, C) f32  o_ref: (TB, C)
    x = x_ref[...].astype(jnp.float32)
    w = w_ref[...].astype(jnp.float32)
    s = jnp.sum(x * w, axis=-1)                       # (TB, C)
    # TODO(synk): output last dim C may be < 128 -> masked stores; padding it
    # would need an unaligned lane concat (skipped: output traffic is tiny).
    o_ref[...] = (s + b_ref[...]).astype(o_ref.dtype)


# --------------------------------------------------------------------------
# Tuning helpers
# --------------------------------------------------------------------------
def _round_up(x, m):
    return ((x + m - 1) // m) * m


def _tpu_tuning():
    """Generation-aware block-size / VMEM-limit targets (robust fallback)."""
    gen = 6
    try:
        import re
        kind = jax.devices()[0].device_kind.lower()
        m = re.search(r"v(\d+)", kind)
        if m:
            gen = int(m.group(1))
    except Exception:
        pass
    if gen >= 7:
        # 64 MiB physical VMEM: big blocks but leave headroom with the limit.
        return dict(target_bytes=8 << 20, vmem_limit=48 << 20, two_tc=True)
    if gen == 6:
        return dict(target_bytes=8 << 20, vmem_limit=64 << 20, two_tc=False)
    if gen == 5:
        # scoped default is only 16 MiB -> must raise it for >2 MiB blocks.
        return dict(target_bytes=4 << 20, vmem_limit=64 << 20, two_tc=False)
    # Older / unknown parts: conservative defaults, no explicit limit.
    return dict(target_bytes=2 << 20, vmem_limit=None, two_tc=False)


def _pick_block_rows(batch, row_bytes, *, target_bytes, sublane, two_tc):
    """Largest sublane-multiple batch tile whose x block is ~target_bytes."""
    tb = (target_bytes // max(row_bytes, 1)) // sublane * sublane
    tb = max(sublane, tb)
    if two_tc and batch >= 2 * sublane:
        # Give both TensorCores work, but only if each per-core block stays
        # above the ~2 MiB DMA-efficiency knee.
        half = (batch // 2) // sublane * sublane
        if half >= sublane and half * row_bytes >= (2 << 20):
            tb = min(tb, half)
    if tb >= batch:
        return batch            # one full-extent block (always layout-legal)
    return tb


def _compiler_params(vmem_limit):
    kwargs = dict(dimension_semantics=("parallel",))
    if vmem_limit is not None:
        kwargs["vmem_limit_bytes"] = vmem_limit
    return pltpu.CompilerParams(**kwargs)


# --------------------------------------------------------------------------
# Parameter preparation (do once, outside the hot path)
# --------------------------------------------------------------------------
def make_groupwise_linear_params(W, b=None, *, flat_seg_cap_bytes=4 << 20):
    """Precompute the folded segment matrix / padded bias for the apply path."""
    _, C, D = W.shape
    dtype = W.dtype
    if b is None:
        b = jnp.zeros((1, C), dtype)
    assert b.shape == (1, C)

    cp = _round_up(C, 128)                      # lane-dense padded class count
    cd = C * D
    wseg_itemsize = jnp.dtype(dtype).itemsize
    wseg_bytes = cd * cp * wseg_itemsize

    # Flat path: whenever D is not an exact multiple of 128 the direct-path
    # (C, D) tile wastes lanes; the flattened layout is fully lane-dense.
    use_flat = (D % 128 != 0) and (wseg_bytes <= flat_seg_cap_bytes)

    if use_flat:
        # Fold W into the class-segment matrix:
        #   Wseg[c*D + d, c'] = W[0, c, d] if c' == c else 0
        class_of_col = jnp.arange(cd, dtype=jnp.int32) // D            # (cd,)
        onehot = class_of_col[:, None] == jnp.arange(cp, dtype=jnp.int32)[None]
        wseg = jnp.where(onehot, W.reshape(cd, 1), jnp.zeros((), dtype))
        wseg = wseg.astype(dtype)                                      # (cd, cp)
        b_pad = jnp.pad(b.astype(jnp.float32), ((0, 0), (0, cp - C)))  # (1, cp)
        return dict(mode="flat", C=C, D=D, cp=cp, wseg=wseg, b_pad=b_pad)

    return dict(mode="direct", C=C, D=D, cp=cp, W=W,
                b_f32=b.astype(jnp.float32))


# --------------------------------------------------------------------------
# Apply (hot path)
# --------------------------------------------------------------------------
def groupwise_linear_apply(x, params):
    B, C, D = x.shape
    assert C == params["C"] and D == params["D"]

    tuning = _tpu_tuning()
    itemsize = jnp.dtype(x.dtype).itemsize
    sublane = max(8, 32 // itemsize)            # 8 f32 / 16 bf16 / 32 int8
    row_bytes = C * D * itemsize
    tb = _pick_block_rows(
        B, row_bytes,
        target_bytes=tuning["target_bytes"],
        sublane=sublane,
        two_tc=tuning["two_tc"],
    )
    grid = (pl.cdiv(B, tb),)
    cparams = _compiler_params(tuning["vmem_limit"])

    if params["mode"] == "flat":
        cd = C * D
        cp = params["cp"]
        wseg = params["wseg"]
        b_pad = params["b_pad"]
        x_flat = x.reshape(B, cd)               # free reshape (row-major)

        # Native-dtype operands: bf16 -> single-pass MXU; f32 -> pin HIGHEST
        # so accuracy matches the f32 reference.
        precision = (jax.lax.Precision.HIGHEST
                     if wseg.dtype == jnp.float32
                     else jax.lax.Precision.DEFAULT)
        # TODO(synk): on v5e with f32 inputs the HIGHEST (multi-pass) matmul
        # can become MXU-bound for large C*D; cast operands to bf16 there if
        # bundle dumps show vmatmul saturating.

        ce = pl.CostEstimate(
            flops=2 * B * cd * cp,
            transcendentals=0,
            bytes_accessed=(B * cd * itemsize
                            + cd * cp * jnp.dtype(wseg.dtype).itemsize
                            + cp * 4
                            + B * cp * itemsize),
        )

        out_pad = pl.pallas_call(
            functools.partial(_gwl_flat_kernel, precision=precision),
            out_shape=jax.ShapeDtypeStruct((B, cp), x.dtype),
            grid_spec=pltpu.PrefetchScalarGridSpec(
                num_scalar_prefetch=0,
                grid=grid,
                in_specs=[
                    pl.BlockSpec((tb, cd), lambda i: (i, 0)),   # x: streamed
                    pl.BlockSpec((cd, cp), lambda i: (0, 0)),   # Wseg: resident
                    pl.BlockSpec((1, cp), lambda i: (0, 0)),    # b: resident
                ],
                out_specs=pl.BlockSpec((tb, cp), lambda i: (i, 0)),
            ),
            compiler_params=cparams,
            cost_estimate=ce,
        )(x_flat, wseg, b_pad)
        return out_pad[:, :C]

    # Direct path: D is an exact multiple of 128, the (C, D) tile is already
    # lane-dense and Wseg would be large; do the reduction on the VPU/XLU.
    W = params["W"]
    b_f32 = params["b_f32"]
    ce = pl.CostEstimate(
        flops=2 * B * C * D,
        transcendentals=0,
        bytes_accessed=(B * C * D * itemsize
                        + C * D * jnp.dtype(W.dtype).itemsize
                        + C * 4
                        + B * C * itemsize),
    )
    return pl.pallas_call(
        _gwl_direct_kernel,
        out_shape=jax.ShapeDtypeStruct((B, C), x.dtype),
        grid_spec=pltpu.PrefetchScalarGridSpec(
            num_scalar_prefetch=0,
            grid=grid,
            in_specs=[
                pl.BlockSpec((tb, C, D), lambda i: (i, 0, 0)),  # x: streamed
                pl.BlockSpec((1, C, D), lambda i: (0, 0, 0)),   # W: resident
                pl.BlockSpec((1, C), lambda i: (0, 0)),         # b: resident
            ],
            out_specs=pl.BlockSpec((tb, C), lambda i: (i, 0)),
        ),
        compiler_params=cparams,
        cost_estimate=ce,
    )(x, W, b_f32)


def groupwise_linear(x, W, b=None):
    """out[n, c] = sum_d W[0, c, d] * x[n, c, d] + b[0, c]."""
    return groupwise_linear_apply(x, make_groupwise_linear_params(W, b))


def groupwise_linear_ref(x, W, b):
    return jnp.sum(W.astype(jnp.float32) * x.astype(jnp.float32), axis=-1) \
        + b.astype(jnp.float32)


# --------------------------------------------------------------------------
# Self-test
# --------------------------------------------------------------------------
if __name__ == "__main__":
    # Small shapes consistent with the module's forward.
    batch, num_class, hidden_dim = 2, 8, 32

    key = jax.random.PRNGKey(0)
    kx, kw, kb = jax.random.split(key, 3)

    # Deterministic init matching reset_parameters(): uniform(-stdv, stdv).
    stdv = 1.0 / math.sqrt(hidden_dim)
    W = jax.random.uniform(kw, (1, num_class, hidden_dim), jnp.float32,
                           minval=-stdv, maxval=stdv)
    b = jax.random.uniform(kb, (1, num_class), jnp.float32,
                           minval=-stdv, maxval=stdv)
    x = jax.random.normal(kx, (batch, num_class, hidden_dim), jnp.float32)

    # 1) Flat (folded-Wseg MXU) path, f32.
    params = make_groupwise_linear_params(W, b)
    assert params["mode"] == "flat"
    out = jax.block_until_ready(groupwise_linear_apply(x, params))
    ref = groupwise_linear_ref(x, W, b)
    assert out.shape == (batch, num_class)
    assert jnp.allclose(out, ref, atol=1e-4, rtol=1e-4), "flat f32 mismatch"

    # 2) Direct fallback path (hidden_dim multiple of 128), f32.
    d2 = 128
    stdv2 = 1.0 / math.sqrt(d2)
    k2x, k2w, k2b = jax.random.split(jax.random.PRNGKey(0), 3)
    W2 = jax.random.uniform(k2w, (1, num_class, d2), jnp.float32, -stdv2, stdv2)
    b2 = jax.random.uniform(k2b, (1, num_class), jnp.float32, -stdv2, stdv2)
    x2 = jax.random.normal(k2x, (4, num_class, d2), jnp.float32)
    params2 = make_groupwise_linear_params(W2, b2)
    assert params2["mode"] == "direct"
    out2 = jax.block_until_ready(groupwise_linear_apply(x2, params2))
    ref2 = groupwise_linear_ref(x2, W2, b2)
    assert out2.shape == (4, num_class)
    assert jnp.allclose(out2, ref2, atol=1e-5, rtol=1e-5), "direct mismatch"

    # 3) Flat path with native bf16 operands (single-pass MXU), loose tol.
    x3 = x.astype(jnp.bfloat16)
    W3 = W.astype(jnp.bfloat16)
    b3 = b.astype(jnp.bfloat16)
    out3 = jax.block_until_ready(groupwise_linear(x3, W3, b3))
    ref3 = groupwise_linear_ref(x3, W3, b3)
    assert out3.shape == (batch, num_class)
    assert jnp.allclose(out3.astype(jnp.float32), ref3, atol=2e-2, rtol=2e-2), \
        "flat bf16 mismatch"

    print("KERNEL_OK")
</pallas_src>

<mosaic_0001>
module attributes {stable_mosaic.version = 11 : i64} {
  func.func @_gwl_flat_kernel(%arg0: i32, %arg1: memref<2x256xf32, #tpu.memory_space<vmem>>, %arg2: memref<256x128xf32, #tpu.memory_space<vmem>>, %arg3: memref<1x128xf32, #tpu.memory_space<vmem>>, %arg4: memref<2x128xf32, #tpu.memory_space<vmem>>) attributes {dimension_semantics = [#tpu.dimension_semantics<parallel>], iteration_bounds = array<i64: 1>, scalar_prefetch = 0 : i64, scratch_operands = 0 : i64, tpu.core_type = #tpu.core_type<tc>, window_params = [{transform_indices = @transform_0, window_bounds = array<i64: 2, 256>}, {pipeline_mode = #tpu.pipeline_mode<synchronous>, transform_indices = @transform_1, window_bounds = array<i64: 256, 128>}, {pipeline_mode = #tpu.pipeline_mode<synchronous>, transform_indices = @transform_2, window_bounds = array<i64: 1, 128>}, {transform_indices = @transform_3, window_bounds = array<i64: 2, 128>}]} {
    %c0 = arith.constant 0 : index
    %c0_0 = arith.constant 0 : index
    %0 = vector.load %arg1[%c0, %c0_0] : memref<2x256xf32, #tpu.memory_space<vmem>>, vector<2x256xf32>
    %c0_1 = arith.constant 0 : index
    %c0_2 = arith.constant 0 : index
    %1 = vector.load %arg2[%c0_1, %c0_2] : memref<256x128xf32, #tpu.memory_space<vmem>>, vector<256x128xf32>
    %cst = arith.constant dense<0.000000e+00> : vector<2x128xf32>
    %2 = tpu.matmul %0, %1, %cst {dimension_numbers = #tpu.dot_dimension_numbers<[1], [0], [0], [1], [0, 0, 1, 1], [], []>, precision = #tpu.contract_precision<fp32>} : vector<2x256xf32>, vector<256x128xf32>, vector<2x128xf32> -> vector<2x128xf32>
    %c0_3 = arith.constant 0 : index
    %c0_4 = arith.constant 0 : index
    %3 = vector.load %arg3[%c0_3, %c0_4] : memref<1x128xf32, #tpu.memory_space<vmem>>, vector<1x128xf32>
    %4 = vector.broadcast %3 : vector<1x128xf32> to vector<2x128xf32>
    %5 = arith.addf %2, %4 : vector<2x128xf32>
    %c0_5 = arith.constant 0 : index
    %c0_6 = arith.constant 0 : index
    %6 = vector.load %arg4[%c0_5, %c0_6] : memref<2x128xf32, #tpu.memory_space<vmem>>, vector<2x128xf32>
    tpu.vector_store %arg4[%c0_5, %c0_6], %5 {strides = array<i32>} : memref<2x128xf32, #tpu.memory_space<vmem>>, vector<2x128xf32>,
    return
  }
  func.func @transform_0(%arg0: i32) -> (i32, i32) {
    %c0_i32 = arith.constant 0 : i32
    %c0_i32_0 = arith.constant 0 : i32
    return %arg0, %c0_i32 : i32, i32
  }
  func.func @transform_1(%arg0: i32) -> (i32, i32) {
    %c0_i32 = arith.constant 0 : i32
    %c0_i32_0 = arith.constant 0 : i32
    %c0_i32_1 = arith.constant 0 : i32
    return %c0_i32, %c0_i32_0 : i32, i32
  }
  func.func @transform_2(%arg0: i32) -> (i32, i32) {
    %c0_i32 = arith.constant 0 : i32
    %c0_i32_0 = arith.constant 0 : i32
    %c0_i32_1 = arith.constant 0 : i32
    return %c0_i32, %c0_i32_0 : i32, i32
  }
  func.func @transform_3(%arg0: i32) -> (i32, i32) {
    %c0_i32 = arith.constant 0 : i32
    %c0_i32_0 = arith.constant 0 : i32
    return %arg0, %c0_i32 : i32, i32
  }
}

</mosaic_0001>

<bundles_post_ra>
// kernel: tpu_custom_call.1
= control target key start
LH: loop header
LB: loop body
LE: loop exit
PB: predicated region body
PF: predicated region fallthrough
CT: control target
= control target key end

     0   :  { %8 = vsyncpa [#allocation3], 0  ;;  %s1960_s0 = inlined_call_operand.hbm [shape: f32[2,256], index: 0, kind: input, shape index: {}]   ;;  %s1961_s1 = inlined_call_operand.hbm [shape: f32[256,128], index: 1, kind: input, shape index: {}]   ;;  %s1962_s2 = inlined_call_operand.hbm [shape: f32[1,128], index: 2, kind: input, shape index: {}]   ;;  %s1963_s3 = inlined_call_operand.hbm [shape: f32[2,128], index: 3, kind: output, shape index: {}]  }
   0x1   :  { %9 = vsyncpa [#allocation6], 0 }
   0x2   :  { %10 = vsyncpa [#allocation4], 0  ;;  %s1486_s12 = smov [#allocation5]   ;;  %s1392_s16 = scalar_lea.hbm %s1961_s1, 4096 }
   0x3   :  { %s26_s13 = sshll.u32 %s1486_s12, 4  ;;  %p1393_p0 = scmp.ne.s32.totalorder %s1961_s1, %s1392_s16  ;;  %s27_s13 = int_to_ptr.vmem [resolvable:$true] %s26_s13 }
   0x4   :  { %p1396_p1 = scmp.lt.u32.totalorder %s1392_s16, %s1961_s1 }
   0x6   :  { %p1398_p2 = pnand %p1396_p1, %p1393_p0 }
   0x8   :  { %1401 = shalt.err (!%p1398_p2)
}
   0x9   :  { %s1402_s21 = scalar_lea.vmem %s27_s13, 4096  ;;  %p1407_p4 = scmp.lt.s32.totalorder %s27_s13, %s27_s13 }
   0xa   :  { %p1403_p3 = scmp.ne.s32.totalorder %s27_s13, %s1402_s21  ;;  %p1408_p5 = scmp.lt.s32.totalorder %s1402_s21, %s1402_s21 }
   0xc   :  { %p1409_p6 = por %p1408_p5, %p1407_p4 }
   0xe   :  { %p1410_p7 = pnand %p1409_p6, %p1403_p3 }
  0x10   :  { %1413 = shalt.err (!%p1410_p7)
}
  0x11   :  { %s1487_s22 = smov 128   ;;  %s1488_s23 = smov 8  }
  0x12   :  { %32 = dma.hbm_to_vmem [thread:$0]  %s1961_s1, 4096, %s27_s13, [#allocation6], %s1487_s22, %s1487_s22, %s1488_s23  }
  0x13   :  { %s1489_s26 = smov [#allocation2]   ;;  %s1490_s28 = smov [#allocation7]  }
  0x14   :  { %s17_s27 = sshll.u32 %s1489_s26, 4  ;;  %s39_s29 = sshll.u32 %s1490_s28, 4  ;;  %s18_s27 = int_to_ptr.vmem [resolvable:$true] %s17_s27  ;;  %s40_s29 = int_to_ptr.vmem [resolvable:$true] %s39_s29 }
  0x15   :  { %s1414_s5 = scalar_lea.hbm %s1960_s0, 64 }
  0x16   :  { %p1415_p8 = scmp.ne.s32.totalorder %s1960_s0, %s1414_s5  ;;  %p1418_p9 = scmp.lt.u32.totalorder %s1414_s5, %s1960_s0 }
  0x18   :  { %p1420_p10 = pnand %p1418_p9, %p1415_p8 }
  0x1a   :  { %1423 = shalt.err (!%p1420_p10)
}
  0x1b   :  { %s1424_s1 = scalar_lea.vmem %s18_s27, 64  ;;  %p1429_p12 = scmp.lt.s32.totalorder %s18_s27, %s18_s27 }
  0x1c   :  { %p1425_p11 = scmp.ne.s32.totalorder %s18_s27, %s1424_s1  ;;  %p1430_p13 = scmp.lt.s32.totalorder %s1424_s1, %s1424_s1 }
  0x1e   :  { %p1431_p0 = por %p1430_p13, %p1429_p12 }
  0x20   :  { %p1432_p1 = pnand %p1431_p0, %p1425_p11 }
  0x22   :  { %1435 = shalt.err (!%p1432_p1)
}
  0x23   :  { %20 = dma.hbm_to_vmem [thread:$0]  %s1960_s0, 64, %s18_s27, [#allocation3]  }
  0x24   :  { %s1436_s14 = scalar_lea.hbm %s1962_s2, 16 }
  0x25   :  { %p1437_p2 = scmp.ne.s32.totalorder %s1962_s2, %s1436_s14  ;;  %p1440_p3 = scmp.lt.u32.totalorder %s1436_s14, %s1962_s2 }
  0x27   :  { %p1442_p4 = pnand %p1440_p3, %p1437_p2 }
  0x29   :  { %1445 = shalt.err (!%p1442_p4)
}
  0x2a   :  { %s1446_s19 = scalar_lea.vmem %s40_s29, 16  ;;  %s1450_s20 = scalar_lea.vmem %s40_s29, 32 }
  0x2b   :  { %p1447_p5 = scmp.ne.s32.totalorder %s40_s29, %s1446_s19  ;;  %p1451_p6 = scmp.lt.s32.totalorder %s40_s29, %s40_s29 }
  0x2c   :  { %p1452_p7 = scmp.lt.s32.totalorder %s1450_s20, %s1446_s19 }
  0x2e   :  { %p1453_p8 = por %p1452_p7, %p1451_p6 }
  0x30   :  { %p1454_p9 = pnand %p1453_p8, %p1447_p5 }
  0x32   :  { %1457 = shalt.err (!%p1454_p9)
}
  0x33   :  { %42 = dma.hbm_to_vmem [thread:$0]  %s1962_s2, 16, %s40_s29, [#allocation6]  }
  0x34   :  { %1480 = dma.done.wait [#allocation3], 64  }
  0x35   :  { %1481 = vsyncadd [#allocation3], 4294967232 }
  0x36   :  { %1482 = dma.done.wait [#allocation6], 4112  }
  0x37   :  { %1483 = vsyncadd [#allocation6], 4294963184  ;;  %v69_v0 = vld [vmem:[#allocation5 + $0x80] sm:$0xff]  ;;  %v70_v1 = vld [vmem:[#allocation5 + $0x88] sm:$0xff]  ;;  %s1491_s2 = smov [#allocation8]  }
  0x38   :  { %v53_v2 = vld [vmem:[#allocation5] sm:$0xff]  ;;  %v152_v3 = vand.u32 4294901760, %v69_v0  ;;  %v155_v4 = vand.u32 4294901760, %v70_v1  ;;  %v54_v5 = vld [vmem:[#allocation5 + $0x8] sm:$0xff]  ;;  %v71_v7 = vld [vmem:[#allocation5 + $0x90] sm:$0xff]  ;;  %s972_s22 = sshll.u32 %s1491_s2, 4  ;;  %s973_s22 = int_to_ptr.vmem [resolvable:$true] %s972_s22 }
  0x39   :  { %v104_v6 = vand.u32 4294901760, %v53_v2  ;;  %v72_v8 = vld [vmem:[#allocation5 + $0x98] sm:$0xff]  ;;  %v107_v9 = vand.u32 4294901760, %v54_v5  ;;  %v158_v10 = vand.u32 4294901760, %v71_v7  ;;  %v55_v12 = vld [vmem:[#allocation5 + $0x10] sm:$0xff]  ;;  %v73_v18 = vld [vmem:[#allocation5 + $0xa0] sm:$0xff]  ;;  %p1463_p11 = scmp.lt.s32.totalorder %s973_s22, %s973_s22 }
  0x3a   :  { %v161_v11 = vand.u32 4294901760, %v72_v8  ;;  %v56_v13 = vld [vmem:[#allocation5 + $0x18] sm:$0xff]  ;;  %v1548_v14 = vpack.c.bf16 %v155_v4, %v152_v3  ;;  %v110_v16 = vand.u32 4294901760, %v55_v12  ;;  %v74_v19 = vld [vmem:[#allocation5 + $0xa8] sm:$0xff]  ;;  %v57_v23 = vld [vmem:[#allocation5 + $0x20] sm:$0xff]  ;;  %v164_v29 = vand.u32 4294901760, %v73_v18 }
  0x3b   :  { %v1550_v15 = vsub.f32 %v53_v2, %v104_v6  ;;  %v113_v17 = vand.u32 4294901760, %v56_v13  ;;  %v1552_v20 = vpack.c.bf16 %v107_v9, %v104_v6  ;;  %v1554_v21 = vsub.f32 %v54_v5, %v107_v9  ;;  %v58_v24 = vld [vmem:[#allocation5 + $0x28] sm:$0xff]  ;;  %v75_v37 = vld [vmem:[#allocation5 + $0xb0] sm:$0xff]  ;;  %v76_v42 = vld [vmem:[#allocation5 + $0xb8] sm:$0xff]  ;;  %s1458_s23 = scalar_lea.vmem %s973_s22, 32 }
  0x3c   :  { %v1556_v22 = vpack.c.bf16 %v161_v11, %v158_v10  ;;  %1195 = vmatprep.subr.bf16.mxu0 %v1548_v14  ;;  %v1559_v25 = vsub.f32 %v71_v7, %v158_v10  ;;  %v1561_v26 = vsub.f32 %v72_v8, %v161_v11  ;;  %v1565_v28 = vsub.f32 %v55_v12, %v110_v16  ;;  %v59_v55 = vld [vmem:[#allocation5 + $0x30] sm:$0xff]  ;;  %v60_v56 = vld [vmem:[#allocation5 + $0x38] sm:$0xff]  ;;  %v77_v5 = vld [vmem:[#allocation5 + $0xc0] sm:$0xff]  ;;  %p1459_p10 = scmp.ne.s32.totalorder %s973_s22, %s1458_s23  ;;  %p1464_p12 = scmp.lt.s32.totalorder %s1458_s23, %s1458_s23 }
  0x3d   :  { %v1563_v27 = vpack.c.bf16 %v113_v17, %v110_v16  ;;  %1197 = vmatpush3.bf16.msra.mxu0 %v1552_v20  ;;  %v167_v30 = vand.u32 4294901760, %v74_v19  ;;  %v1568_v31 = vsub.f32 %v69_v0, %v152_v3  ;;  %v1570_v32 = vsub.f32 %v70_v1, %v155_v4  ;;  %v78_v6 = vld [vmem:[#allocation5 + $0xc8] sm:$0xff]  ;;  %v61_v11 = vld [vmem:[#allocation5 + $0x40] sm:$0xff] }
  0x3e   :  { %1199 = vmatprep.subr.bf16.mxu0 %v1556_v22  ;;  %v116_v33 = vand.u32 4294901760, %v57_v23  ;;  %v119_v34 = vand.u32 4294901760, %v58_v24  ;;  %v1979_v35 = vand.u32 4294901760, %v1550_v15  ;;  %v1978_v36 = vand.u32 4294901760, %v1554_v21  ;;  %p1465_p13 = por %p1464_p12, %p1463_p11 }
  0x3f   :  { %v1575_v38 = vsub.f32 %v56_v13, %v113_v17  ;;  %v1577_v39 = vpack.c.bf16 %v167_v30, %v164_v29  ;;  %v1579_v40 = vsub.f32 %v73_v18, %v164_v29  ;;  %v1983_v41 = vand.u32 4294901760, %v1568_v31  ;;  %v62_v29 = vld [vmem:[#allocation5 + $0x48] sm:$0xff] }
  0x40   :  { %v1582_v43 = vsub.f32 %v74_v19, %v167_v30  ;;  %v1981_v44 = vand.u32 4294901760, %v1570_v32  ;;  %v1585_v45 = vpack.c.bf16 %v119_v34, %v116_v33  ;;  %v1587_v46 = vsub.f32 %v57_v23, %v116_v33  ;;  %p1466_p0 = pnand %p1465_p13, %p1459_p10 }
  0x41   :  { %1201 = vmatpush3.bf16.msra.mxu0 %v1563_v27  ;;  %v331_v47 = vsub.f32 %v1568_v31, %v1983_v41  ;;  %v219_v48 = vsub.f32 %v1550_v15, %v1979_v35  ;;  %v226_v49 = vsub.f32 %v1554_v21, %v1978_v36  ;;  %v170_v50 = vand.u32 4294901760, %v75_v37  ;;  %v983_v41 = vld.sshfl [vmem:[#allocation2] sm:$0x33 pattern:$0x76325410] }
  0x42   :  { %1203 = vmatprep.subr.bf16.mxu0 %v1577_v39  ;;  %v338_v51 = vsub.f32 %v1570_v32, %v1981_v44  ;;  %v173_v52 = vand.u32 4294901760, %v76_v42  ;;  %v1976_v53 = vand.u32 4294901760, %v1559_v25  ;;  %v1974_v54 = vand.u32 4294901760, %v1561_v26 }
  0x43   :  { %v332_v57 = vand.u32 4294901760, %v331_v47  ;;  %v1605_v58 = vsub.f32 %v58_v24, %v119_v34  ;;  %v220_v59 = vand.u32 4294901760, %v219_v48  ;;  %v227_v60 = vand.u32 4294901760, %v226_v49 }
  0x44   :  { %v339_v61 = vand.u32 4294901760, %v338_v51  ;;  %v1607_v62 = vpack.c.bf16 %v173_v52, %v170_v50  ;;  %v1609_v63 = vsub.f32 %v75_v37, %v170_v50  ;;  %v345_v0 = vsub.f32 %v1559_v25, %v1976_v53 }
  0x45   :  { %1205 = vmatpush3.bf16.msra.mxu0 %v1585_v45  ;;  %v1228_v1 = vpack.c.bf16 %v227_v60, %v220_v59  ;;  %v352_v2 = vsub.f32 %v1561_v26, %v1974_v54  ;;  %v122_v3 = vand.u32 4294901760, %v59_v55  ;;  %v125_v4 = vand.u32 4294901760, %v60_v56  ;;  %v80_v59 = vld [vmem:[#allocation5 + $0xd8] sm:$0xff] }
  0x46   :  { %v1226_v7 = vpack.c.bf16 %v339_v61, %v332_v57  ;;  %1207 = vmatprep.subr.bf16.mxu0 %v1607_v62  ;;  %v346_v8 = vand.u32 4294901760, %v345_v0  ;;  %v1973_v9 = vand.u32 4294901760, %v1565_v28  ;;  %v1971_v10 = vand.u32 4294901760, %v1575_v38  ;;  %v79_v57 = vld [vmem:[#allocation5 + $0xd0] sm:$0xff]  ;;  %v84_v54 = vld [vmem:[#allocation5 + $0xf8] sm:$0xff] }
  0x47   :  { %v1621_v12 = vsub.f32 %v76_v42, %v173_v52  ;;  %v353_v13 = vand.u32 4294901760, %v352_v2  ;;  %v1623_v16 = vpack.c.bf16 %v125_v4, %v122_v3  ;;  %v1625_v17 = vsub.f32 %v59_v55, %v122_v3 }
  0x48   :  { %1227 = vmatprep.subr.bf16.mxu1 %v1226_v7  ;;  %v233_v18 = vsub.f32 %v1565_v28, %v1973_v9  ;;  %v240_v19 = vsub.f32 %v1575_v38, %v1971_v10  ;;  %v176_v23 = vand.u32 4294901760, %v77_v5  ;;  %v179_v24 = vand.u32 4294901760, %v78_v6  ;;  %v83_v9 = vld [vmem:[#allocation5 + $0xf0] sm:$0xff] }
  0x49   :  { %1229 = vmatpush3.bf16.msra.mxu1 %v1228_v1  ;;  %v1230_v30 = vpack.c.bf16 %v353_v13, %v346_v8  ;;  %1209 = vmatpush3.bf16.msra.mxu0 %v1623_v16  ;;  %v1969_v33 = vand.u32 4294901760, %v1579_v40  ;;  %v1968_v34 = vand.u32 4294901760, %v1582_v43  ;;  %v128_v37 = vand.u32 4294901760, %v61_v11  ;;  %v63_v1 = vld [vmem:[#allocation5 + $0x50] sm:$0xff] }
  0x4a   :  { %v1636_v42 = vsub.f32 %v60_v56, %v125_v4  ;;  %v234_v47 = vand.u32 4294901760, %v233_v18  ;;  %v241_v48 = vand.u32 4294901760, %v240_v19  ;;  %v1638_v49 = vpack.c.bf16 %v179_v24, %v176_v23  ;;  %v64_v18 = vld [vmem:[#allocation5 + $0x58] sm:$0xff] }
  0x4b   :  { %1231 = vmatprep.subr.bf16.mxu1 %v1230_v30  ;;  %v1640_v50 = vsub.f32 %v77_v5, %v176_v23  ;;  %v359_v51 = vsub.f32 %v1579_v40, %v1969_v33  ;;  %v366_v52 = vsub.f32 %v1582_v43, %v1968_v34  ;;  %v131_v55 = vand.u32 4294901760, %v62_v29 }
  0x4c   :  { %v1232_v56 = vpack.c.bf16 %v241_v48, %v234_v47  ;;  %1211 = vmatprep.subr.bf16.mxu0 %v1638_v49  ;;  %v1649_v60 = vsub.f32 %v78_v6, %v179_v24  ;;  %v1966_v61 = vand.u32 4294901760, %v1587_v46  ;;  %v1964_v0 = vand.u32 4294901760, %v1605_v58 }
  0x4d   :  { %v360_v2 = vand.u32 4294901760, %v359_v51  ;;  %v367_v3 = vand.u32 4294901760, %v366_v52  ;;  %v1653_v4 = vpack.c.bf16 %v131_v55, %v128_v37  ;;  %v1655_v5 = vsub.f32 %v61_v11, %v128_v37 }
  0x4e   :  { %1233 = vmatpush3.bf16.msra.mxu1 %v1232_v56  ;;  %v247_v7 = vsub.f32 %v1587_v46, %v1966_v61  ;;  %v254_v6 = vsub.f32 %v1605_v58, %v1964_v0  ;;  %v182_v8 = vand.u32 4294901760, %v79_v57  ;;  %v185_v13 = vand.u32 4294901760, %v80_v59  ;;  %v82_v0 = vld [vmem:[#allocation5 + $0xe8] sm:$0xff] }
  0x4f   :  { %v1234_v19 = vpack.c.bf16 %v367_v3, %v360_v2  ;;  %1213 = vmatpush3.bf16.msra.mxu0 %v1653_v4  ;;  %v1965_v23 = vand.u32 4294901760, %v1609_v63  ;;  %v1967_v11 = vand.u32 4294901760, %v1621_v12  ;;  %v134_v24 = vand.u32 4294901760, %v63_v1  ;;  %v81_v3 = vld [vmem:[#allocation5 + $0xe0] sm:$0xff] }
  0x50   :  { %v1666_v30 = vsub.f32 %v62_v29, %v131_v55  ;;  %v248_v37 = vand.u32 4294901760, %v247_v7  ;;  %v255_v47 = vand.u32 4294901760, %v254_v6  ;;  %v1668_v48 = vpack.c.bf16 %v185_v13, %v182_v8  ;;  %v65_v6 = vld [vmem:[#allocation5 + $0x60] sm:$0xff] }
  0x51   :  { %1235 = vmatprep.subr.bf16.mxu1 %v1234_v19  ;;  %v1670_v51 = vsub.f32 %v79_v57, %v182_v8  ;;  %v373_v52 = vsub.f32 %v1609_v63, %v1965_v23  ;;  %v380_v56 = vsub.f32 %v1621_v12, %v1967_v11  ;;  %v137_v2 = vand.u32 4294901760, %v64_v18  ;;  %v66_v11 = vld [vmem:[#allocation5 + $0x68] sm:$0xff] }
  0x52   :  { %v1236_v29 = vpack.c.bf16 %v255_v47, %v248_v37  ;;  %1215 = vmatprep.subr.bf16.mxu0 %v1668_v48  ;;  %v1679_v55 = vsub.f32 %v80_v59, %v185_v13  ;;  %v1970_v7 = vand.u32 4294901760, %v1625_v17  ;;  %v1972_v57 = vand.u32 4294901760, %v1636_v42 }
  0x53   :  { %v374_v8 = vand.u32 4294901760, %v373_v52  ;;  %v381_v19 = vand.u32 4294901760, %v380_v56  ;;  %v1683_v23 = vpack.c.bf16 %v137_v2, %v134_v24  ;;  %v1685_v61 = vsub.f32 %v63_v1, %v134_v24 }
  0x54   :  { %1237 = vmatpush3.bf16.msra.mxu1 %v1236_v29  ;;  %v261_v37 = vsub.f32 %v1625_v17, %v1970_v7  ;;  %v268_v59 = vsub.f32 %v1636_v42, %v1972_v57  ;;  %v188_v13 = vand.u32 4294901760, %v81_v3  ;;  %v191_v47 = vand.u32 4294901760, %v82_v0 }
  0x55   :  { %v1238_v34 = vpack.c.bf16 %v381_v19, %v374_v8  ;;  %1217 = vmatpush3.bf16.msra.mxu0 %v1683_v23  ;;  %v1975_v52 = vand.u32 4294901760, %v1640_v50  ;;  %v1977_v1 = vand.u32 4294901760, %v1649_v60  ;;  %v140_v24 = vand.u32 4294901760, %v65_v6 }
  0x56   :  { %v1696_v56 = vsub.f32 %v64_v18, %v137_v2  ;;  %v262_v29 = vand.u32 4294901760, %v261_v37  ;;  %v269_v33 = vand.u32 4294901760, %v268_v59  ;;  %v1698_v7 = vpack.c.bf16 %v191_v47, %v188_v13  ;;  %v67_v37 = vld [vmem:[#allocation5 + $0x70] sm:$0xff] }
  0x57   :  { %1239 = vmatprep.subr.bf16.mxu1 %v1238_v34  ;;  %v1700_v10 = vsub.f32 %v81_v3, %v188_v13  ;;  %v387_v8 = vsub.f32 %v1640_v50, %v1975_v52  ;;  %v394_v19 = vsub.f32 %v1649_v60, %v1977_v1  ;;  %v143_v57 = vand.u32 4294901760, %v66_v11  ;;  %v68_v1 = vld [vmem:[#allocation5 + $0x78] sm:$0xff] }
  0x58   :  { %2007 = vst [vmem:[#allocation12_spill] sm:$0xff] %v1698_v7  ;;  %v1240_v18 = vpack.c.bf16 %v269_v33, %v262_v29  ;;  %1219 = vmatprep.subr.bf16.mxu0 %v1698_v7  ;;  %v1709_v2 = vsub.f32 %v82_v0, %v191_v47  ;;  %v1980_v34 = vand.u32 4294901760, %v1655_v5  ;;  %v1982_v3 = vand.u32 4294901760, %v1666_v30 }
  0x59   :  { %v388_v59 = vand.u32 4294901760, %v387_v8  ;;  %v395_v13 = vand.u32 4294901760, %v394_v19  ;;  %v1713_v52 = vpack.c.bf16 %v143_v57, %v140_v24  ;;  %v1715_v53 = vsub.f32 %v65_v6, %v140_v24 }
  0x5a   :  { %1241 = vmatpush3.bf16.msra.mxu1 %v1240_v18  ;;  %v275_v33 = vsub.f32 %v1655_v5, %v1980_v34  ;;  %v282_v0 = vsub.f32 %v1666_v30, %v1982_v3  ;;  %v194_v47 = vand.u32 4294901760, %v83_v9  ;;  %v197_v29 = vand.u32 4294901760, %v84_v54 }
  0x5b   :  { %2008 = vst [vmem:[#allocation13_spill] sm:$0xff] %v1713_v52  ;;  %v1242_v36 = vpack.c.bf16 %v395_v13, %v388_v59  ;;  %1221 = vmatpush3.bf16.msra.mxu0 %v1713_v52  ;;  %v1988_v8 = vand.u32 4294901760, %v1670_v51  ;;  %v1986_v6 = vand.u32 4294901760, %v1679_v55  ;;  %v146_v24 = vand.u32 4294901760, %v67_v37 }
  0x5c   :  { %v1726_v19 = vsub.f32 %v66_v11, %v143_v57  ;;  %v276_v18 = vand.u32 4294901760, %v275_v33  ;;  %v283_v35 = vand.u32 4294901760, %v282_v0  ;;  %v1728_v34 = vpack.c.bf16 %v197_v29, %v194_v47 }
  0x5d   :  { %1243 = vmatprep.subr.bf16.mxu1 %v1242_v36  ;;  %v1730_v44 = vsub.f32 %v83_v9, %v194_v47  ;;  %v401_v59 = vsub.f32 %v1670_v51, %v1988_v8  ;;  %v408_v13 = vsub.f32 %v1679_v55, %v1986_v6  ;;  %v149_v3 = vand.u32 4294901760, %v68_v1 }
  0x5e   :  { %2009 = vst [vmem:[#allocation14_spill] sm:$0xff] %v1728_v34  ;;  %v1244_v52 = vpack.c.bf16 %v283_v35, %v276_v18  ;;  %1223 = vmatprep.subr.bf16.mxu0 %v1728_v34  ;;  %v1739_v11 = vsub.f32 %v84_v54, %v197_v29  ;;  %v1987_v57 = vand.u32 4294901760, %v1685_v61  ;;  %v1989_v36 = vand.u32 4294901760, %v1696_v56 }
  0x5f   :  { %v402_v9 = vand.u32 4294901760, %v401_v59  ;;  %v409_v33 = vand.u32 4294901760, %v408_v13  ;;  %v1743_v0 = vpack.c.bf16 %v149_v3, %v146_v24  ;;  %v1745_v47 = vsub.f32 %v67_v37, %v146_v24 }
  0x60   :  { %1245 = vmatpush3.bf16.msra.mxu1 %v1244_v52  ;;  %v289_v6 = vsub.f32 %v1685_v61, %v1987_v57  ;;  %v296_v35 = vsub.f32 %v1696_v56, %v1989_v36  ;;  %v100_v54 = vcombine.high %v983_v41, %v983_v41  ;;  %v1753_v29 = vand.u32 4294901760, %v983_v41 }
  0x61   :  { %2010 = vst [vmem:[#allocation15_spill] sm:$0xff] %v1743_v0  ;;  %v1246_v18 = vpack.c.bf16 %v409_v33, %v402_v9  ;;  %1225 = vmatpush3.bf16.msra.mxu0 %v1743_v0  ;;  %v1992_v59 = vand.u32 4294901760, %v1700_v10  ;;  %v1995_v37 = vand.u32 4294901760, %v1709_v2  ;;  %v1258_v52 = vpack.c.bf16 %v1570_v32, %v1568_v31 }
  0x62   :  { %v290_v24 = vand.u32 4294901760, %v289_v6  ;;  %v297_v13 = vand.u32 4294901760, %v296_v35  ;;  %v1760_v57 = vand.u32 4294901760, %v100_v54  ;;  %v1763_v8 = vsub.f32 %v983_v41, %v1753_v29 }
  0x63   :  { %1247 = vmatprep.subr.bf16.mxu1 %v1246_v18  ;;  %v415_v9 = vsub.f32 %v1700_v10, %v1992_v59  ;;  %v422_v33 = vsub.f32 %v1709_v2, %v1995_v37  ;;  %1259 = vmatprep.subr.bf16.mxu0 %v1258_v52  ;;  %v1996_v36 = vand.u32 4294901760, %v1715_v53  ;;  %v1997_v6 = vand.u32 4294901760, %v1726_v19 }
  0x64   :  { %2011 = vst [vmem:[#allocation16_spill] sm:$0xff] %v1760_v57  ;;  %2012 = vst [vmem:[#allocation17_spill] sm:$0xff] %v1763_v8  ;;  %v1773_v35 = vsub.f32 %v68_v1, %v149_v3  ;;  %v1248_v0 = vpack.c.bf16 %v297_v13, %v290_v24  ;;  %v1776_v41 = vsub.f32 %v100_v54, %v1760_v57  ;;  %v2000_v18 = vand.u32 4294901760, %v1763_v8 }
  0x65   :  { %440 = vmatprep.mubr.f32.mxu1 %v1760_v57  ;;  %v416_v59 = vand.u32 4294901760, %v415_v9  ;;  %v423_v34 = vand.u32 4294901760, %v422_v33  ;;  %v303_v52 = vsub.f32 %v1715_v53, %v1996_v36  ;;  %v310_v37 = vsub.f32 %v1726_v19, %v1997_v6 }
  0x66   :  { %1249 = vmatpush3.bf16.msra.mxu1 %v1248_v0  ;;  %v201_v1 = vand.u32 4294901760, %v1776_v41  ;;  %v208_v3 = vsub.f32 %v1763_v8, %v2000_v18  ;;  %v2005_v54 = vand.u32 4294901760, %v1730_v44  ;;  %v435_v24 = vand.u32 4294901760, %v1739_v11 }
  0x67   :  { %v1250_v13 = vpack.c.bf16 %v423_v34, %v416_v59  ;;  %v304_v9 = vand.u32 4294901760, %v303_v52  ;;  %v311_v33 = vand.u32 4294901760, %v310_v37  ;;  %v2006_v8 = vand.u32 4294901760, %v1745_v47 }
  0x68   :  { %v202_v36 = vsub.f32 %v1776_v41, %v201_v1  ;;  %v429_v6 = vsub.f32 %v1730_v44, %v2005_v54  ;;  %v436_v0 = vsub.f32 %v1739_v11, %v435_v24  ;;  %v209_v57 = vand.u32 4294901760, %v208_v3 }
  0x69   :  { %1251 = vmatprep.subr.bf16.mxu1 %v1250_v13  ;;  %v1252_v18 = vpack.c.bf16 %v311_v33, %v304_v9  ;;  %v323_v7 = vand.u32 4294901760, %v1773_v35  ;;  %v1260_v59 = vpack.c.bf16 %v1554_v21, %v1550_v15  ;;  %v1262_v54 = vpack.c.bf16 %v1561_v26, %v1559_v25 }
  0x6a   :  { %v203_v34 = vand.u32 4294901760, %v202_v36  ;;  %v430_v37 = vand.u32 4294901760, %v429_v6  ;;  %v437_v52 = vand.u32 4294901760, %v436_v0  ;;  %v317_v13 = vsub.f32 %v1745_v47, %v2006_v8 }
  0x6b   :  { %1253 = vmatpush3.bf16.msra.mxu1 %v1252_v18  ;;  %v324_v3 = vsub.f32 %v1773_v35, %v323_v7  ;;  %v1264_v6 = vpack.c.bf16 %v1575_v38, %v1565_v28  ;;  %v1266_v18 = vpack.c.bf16 %v1582_v43, %v1579_v40  ;;  %v1268_v8 = vpack.c.bf16 %v1605_v58, %v1587_v46 }
  0x6c   :  { %204 = vmatprep.mubr.f32.mxu0 %v203_v34  ;;  %v1254_v9 = vpack.c.bf16 %v437_v52, %v430_v37  ;;  %v318_v36 = vand.u32 4294901760, %v317_v13  ;;  %v2013_v34 = vand.u32 4294901760, %v1568_v31  ;;  %v2016_v52 = vand.u32 4294901760, %v1554_v21 }
  0x6d   :  { %210 = vmatmul.mubr.f32.vlgmr.msra.gmra.mrb[0].mxu0 %v209_v57  ;;  %v325_v33 = vand.u32 4294901760, %v324_v3  ;;  %v2014_v57 = vand.u32 4294901760, %v1570_v32  ;;  %v2017_v3 = vand.u32 4294901760, %v1559_v25  ;;  %v2021_v31 = vand.u32 4294901760, %v1579_v40 }
  0x6e   :  { %1261 = vmatpush3.bf16.msra.mxu0 %v1260_v59  ;;  %1255 = vmatprep.subr.bf16.mxu1 %v1254_v9  ;;  %v2015_v59 = vand.u32 4294901760, %v1550_v15  ;;  %v2022_v32 = vand.u32 4294901760, %v1582_v43  ;;  %v2023_v15 = vand.u32 4294901760, %v1587_v46  ;;  %v2024_v21 = vand.u32 4294901760, %v1605_v58 }
  0x6f   :  { %1263 = vmatprep.subr.bf16.mxu0 %v1262_v54  ;;  %v1256_v0 = vpack.c.bf16 %v325_v33, %v318_v36  ;;  %577 = vmatprep.mubr.f32.mxu0 %v1776_v41  ;;  %v1322_v37 = vpack.c.bf16 %v2014_v57, %v2013_v34  ;;  %v2018_v54 = vand.u32 4294901760, %v1561_v26  ;;  %v2019_v36 = vand.u32 4294901760, %v1565_v28 }
  0x70   :  { %v1324_v13 = vpack.c.bf16 %v2016_v52, %v2015_v59  ;;  %v2020_v33 = vand.u32 4294901760, %v1575_v38  ;;  %v1330_v34 = vpack.c.bf16 %v2022_v32, %v2021_v31  ;;  %v1332_v57 = vpack.c.bf16 %v2024_v21, %v2023_v15 }
  0x71   :  { %v1326_v9 = vpack.c.bf16 %v2018_v54, %v2017_v3  ;;  %1257 = vmatpush3.bf16.msra.mxu1 %v1256_v0  ;;  %v2025_v25 = vand.u32 4294901760, %v1609_v63  ;;  %v2026_v26 = vand.u32 4294901760, %v1621_v12  ;;  %v2027_v28 = vand.u32 4294901760, %v1625_v17 }
  0x72   :  { %v1328_v41 = vpack.c.bf16 %v2020_v33, %v2019_v36  ;;  %v2028_v38 = vand.u32 4294901760, %v1636_v42  ;;  %v2029_v40 = vand.u32 4294901760, %v1640_v50  ;;  %v2030_v43 = vand.u32 4294901760, %v1649_v60  ;;  %1265 = vmatpush3.bf16.msra.mxu0 %v1264_v6  ;;  %1291 = vmatprep.subr.bf16.mxu1 %v1548_v14 }
  0x73   :  { %v1334_v59 = vpack.c.bf16 %v2026_v26, %v2025_v25  ;;  %v2031_v46 = vand.u32 4294901760, %v1655_v5  ;;  %v2032_v58 = vand.u32 4294901760, %v1666_v30  ;;  %v2033_v54 = vand.u32 4294901760, %v1670_v51  ;;  %1267 = vmatprep.subr.bf16.mxu0 %v1266_v18 }
  0x74   :  { %v1336_v52 = vpack.c.bf16 %v2028_v38, %v2027_v28  ;;  %v1338_v0 = vpack.c.bf16 %v2030_v43, %v2029_v40  ;;  %v2034_v36 = vand.u32 4294901760, %v1679_v55  ;;  %v2035_v31 = vand.u32 4294901760, %v1685_v61  ;;  %442 = vmatmul.mubr.f32.vlgmr.msra.gmra.mrb[0].mxu1 %v1753_v29 }
  0x75   :  { %v1340_v3 = vpack.c.bf16 %v2032_v58, %v2031_v46  ;;  %v2036_v32 = vand.u32 4294901760, %v1696_v56  ;;  %v1270_v6 = vpack.c.bf16 %v1621_v12, %v1609_v63  ;;  %v2037_v21 = vand.u32 4294901760, %v1715_v53  ;;  %1293 = vmatpush3.bf16.msra.mxu1 %v1552_v20  ;;  %684 = vmatprep.mubr.f32.mxu1 %v201_v1 }
  0x76   :  { %v1342_v33 = vpack.c.bf16 %v2034_v36, %v2033_v54  ;;  %v2038_v25 = vand.u32 4294901760, %v1726_v19  ;;  %1269 = vmatpush3.bf16.msra.mxu0 %v1268_v8  ;;  %1295 = vmatprep.subr.bf16.mxu1 %v1556_v22  ;;  %v1272_v18 = vpack.c.bf16 %v1636_v42, %v1625_v17  ;;  %v1274_v63 = vpack.c.bf16 %v1649_v60, %v1640_v50 }
  0x77   :  { %v1867_v15 = vpack.c.bf16 %v2036_v32, %v2035_v31  ;;  %1271 = vmatprep.subr.bf16.mxu0 %v1270_v6  ;;  %v1276_v12 = vpack.c.bf16 %v1666_v30, %v1655_v5  ;;  %v1278_v8 = vpack.c.bf16 %v1679_v55, %v1670_v51  ;;  %v1280_v17 = vpack.c.bf16 %v1696_v56, %v1685_v61  ;;  %v2039_v5 = vld [vmem:[#allocation12_spill] sm:$0xff]  ;;  %v2041_v30 = vld [vmem:[#allocation13_spill] sm:$0xff]  ;;  %v2042_v51 = vld [vmem:[#allocation14_spill] sm:$0xff] }
  0x78   :  { %v1875_v26 = vpack.c.bf16 %v2038_v25, %v2037_v21  ;;  %v1282_v42 = vpack.c.bf16 %v1709_v2, %v1700_v10  ;;  %v1284_v50 = vpack.c.bf16 %v1726_v19, %v1715_v53  ;;  %v1286_v60 = vpack.c.bf16 %v1739_v11, %v1730_v44  ;;  %v2040_v53 = vld [vmem:[#allocation17_spill] sm:$0xff]  ;;  %v2043_v55 = vld [vmem:[#allocation16_spill] sm:$0xff]  ;;  %v2044_v56 = vld [vmem:[#allocation15_spill] sm:$0xff] }
  0x79   :  { %1297 = vmatpush3.bf16.msra.mxu1 %v1563_v27  ;;  %v1288_v61 = vpack.c.bf16 %v1773_v35, %v1745_v47  ;;  %v2045_v19 = vand.u32 4294901760, %v2040_v53 }
  0x7a   :  { %1273 = vmatpush3.bf16.msra.mxu0 %v1272_v18  ;;  %1299 = vmatprep.subr.bf16.mxu1 %v1577_v39 }
  0x7b   :  { %1275 = vmatprep.subr.bf16.mxu0 %v1274_v63 }
  0x7d   :  { %1301 = vmatpush3.bf16.msra.mxu1 %v1585_v45 }
  0x7e   :  { %1277 = vmatpush3.bf16.msra.mxu0 %v1276_v12  ;;  %1303 = vmatprep.subr.bf16.mxu1 %v1607_v62 }
  0x7f   :  { %1279 = vmatprep.subr.bf16.mxu0 %v1278_v8 }
  0x81   :  { %1305 = vmatpush3.bf16.msra.mxu1 %v1623_v16 }
  0x82   :  { %1281 = vmatpush3.bf16.msra.mxu0 %v1280_v17  ;;  %1307 = vmatprep.subr.bf16.mxu1 %v1638_v49 }
  0x83   :  { %1283 = vmatprep.subr.bf16.mxu0 %v1282_v42 }
  0x85   :  { %1309 = vmatpush3.bf16.msra.mxu1 %v1653_v4 }
  0x86   :  { %1285 = vmatpush3.bf16.msra.mxu0 %v1284_v50  ;;  %1311 = vmatprep.subr.bf16.mxu1 %v1668_v48 }
  0x87   :  { %1287 = vmatprep.subr.bf16.mxu0 %v1286_v60 }
  0x89   :  { %1313 = vmatpush3.bf16.msra.mxu1 %v1683_v23 }
  0x8a   :  { %1289 = vmatpush3.bf16.msra.mxu0 %v1288_v61  ;;  %1315 = vmatprep.subr.bf16.mxu1 %v2039_v5 }
  0x8b   :  { %1323 = vmatprep.subr.bf16.mxu0 %v1322_v37 }
  0x8d   :  { %580 = vmatmul.mubr.f32.vlgmr.msra.gmra.mrb[2].mxu0 %v2040_v53  ;;  %1317 = vmatpush3.bf16.msra.mxu1 %v2041_v30 }
  0x8e   :  { %1325 = vmatpush3.bf16.msra.mxu0 %v1324_v13  ;;  %1319 = vmatprep.subr.bf16.mxu1 %v2042_v51 }
  0x8f   :  { %1327 = vmatprep.subr.bf16.mxu0 %v1326_v9  ;;  %854 = vmatprep.mubr.f32.mxu0 %v2043_v55 }
  0x91   :  { %1321 = vmatpush3.bf16.msra.mxu1 %v2044_v56 }
  0x92   :  { %1329 = vmatpush3.bf16.msra.mxu0 %v1328_v41  ;;  %1355 = vmatprep.subr.bf16.mxu1 %v1548_v14  ;;  %v2046_v14 = vand.u32 4294901760, %v1700_v10 }
  0x93   :  { %1331 = vmatprep.subr.bf16.mxu0 %v1330_v34 }
  0x94   :  { %688 = vmatmul.mubr.f32.vlgmr.msra.gmra.mrb[2].mxu1 %v2045_v19 }
  0x95   :  { %1357 = vmatpush3.bf16.msra.mxu1 %v1552_v20  ;;  %958 = vmatprep.mubr.f32.mxu1 %v2043_v55  ;;  %v2047_v20 = vand.u32 4294901760, %v1709_v2 }
  0x96   :  { %1333 = vmatpush3.bf16.msra.mxu0 %v1332_v57  ;;  %1359 = vmatprep.subr.bf16.mxu1 %v1556_v22  ;;  %v2048_v22 = vand.u32 4294901760, %v1730_v44 }
  0x97   :  { %1335 = vmatprep.subr.bf16.mxu0 %v1334_v59  ;;  %v1346_v1 = vpack.c.bf16 %v2047_v20, %v2046_v14 }
  0x99   :  { %1361 = vmatpush3.bf16.msra.mxu1 %v1563_v27  ;;  %v1350_v27 = vpack.c.bf16 %v435_v24, %v2048_v22 }
  0x9a   :  { %1337 = vmatpush3.bf16.msra.mxu0 %v1336_v52  ;;  %1363 = vmatprep.subr.bf16.mxu1 %v1577_v39  ;;  %v2049_v39 = vand.u32 4294901760, %v1745_v47 }
  0x9b   :  { %1339 = vmatprep.subr.bf16.mxu0 %v1338_v0 }
  0x9d   :  { %1365 = vmatpush3.bf16.msra.mxu1 %v1585_v45  ;;  %v1352_v45 = vpack.c.bf16 %v323_v7, %v2049_v39 }
  0x9e   :  { %1341 = vmatpush3.bf16.msra.mxu0 %v1340_v3  ;;  %1367 = vmatprep.subr.bf16.mxu1 %v1607_v62 }
  0x9f   :  { %1343 = vmatprep.subr.bf16.mxu0 %v1342_v33 }
  0xa1   :  { %1369 = vmatpush3.bf16.msra.mxu1 %v1623_v16  ;;  %v982_v16 = vld [vmem:[#allocation7] ss:$0 sm:$0xff] }
  0xa2   :  { %1345 = vmatpush3.bf16.msra.mxu0 %v1867_v15  ;;  %1371 = vmatprep.subr.bf16.mxu1 %v1638_v49 }
  0xa3   :  { %1347 = vmatprep.subr.bf16.mxu0 %v1346_v1 }
  0xa5   :  { %1373 = vmatpush3.bf16.msra.mxu1 %v1653_v4 }
  0xa6   :  { %1349 = vmatpush3.bf16.msra.mxu0 %v1875_v26  ;;  %1375 = vmatprep.subr.bf16.mxu1 %v1668_v48 }
  0xa7   :  { %1351 = vmatprep.subr.bf16.mxu0 %v1350_v27 }
  0xa9   :  { %1377 = vmatpush3.bf16.msra.mxu1 %v1683_v23 }
  0xaa   :  { %1353 = vmatpush3.bf16.msra.mxu0 %v1352_v45  ;;  %1379 = vmatprep.subr.bf16.mxu1 %v2039_v5 }
  0xad   :  { %856 = vmatmul.mubr.f32.vlgmr.msra.gmra.mrb[4].mxu0 %v1753_v29  ;;  %1381 = vmatpush3.bf16.msra.mxu1 %v2041_v30 }
  0xae   :  { %1383 = vmatprep.subr.bf16.mxu1 %v2042_v51 }
  0xb1   :  { %1385 = vmatpush3.bf16.msra.mxu1 %v2044_v56 }
  0xb4   :  { %960 = vmatmul.mubr.f32.vlgmr.msra.gmra.mrb[4].mxu1 %v1753_v29 }
 0x140   :  { %v1016_v44 = vpop.f32.mrb[0].mxu0 }
 0x141   :  { %v1017_v62 = vpop.f32.mrb[1].mxu0 }
 0x142   :  { %v1018_v10 = vadd.f32 %v1017_v62, %v1016_v44 }
 0x144   :  { %v212_v49 = vadd.f32 %v1018_v10, %v982_v16 }
 0x147   :  { %v1051_v4 = vpop.f32.mrb[0].mxu1 }
 0x148   :  { %v1052_v23 = vpop.f32.mrb[1].mxu1 }
 0x149   :  { %v1053_v48 = vadd.f32 %v1052_v23, %v1051_v4 }
 0x14b   :  { %v444_v7 = vadd.f32 %v1053_v48, %v212_v49 }
 0x160   :  { %v1086_v2 = vpop.f32.mrb[2].mxu0 }
 0x161   :  { %v1087_v11 = vpop.f32.mrb[3].mxu0 }
 0x162   :  { %v1088_v47 = vadd.f32 %v1087_v11, %v1086_v2 }
 0x164   :  { %v582_v35 = vadd.f32 %v1088_v47, %v444_v7 }
 0x167   :  { %v1121_v24 = vpop.f32.mrb[2].mxu1 }
 0x168   :  { %v1122_v37 = vpop.f32.mrb[3].mxu1 }
 0x169   :  { %v1123_v13 = vadd.f32 %v1122_v37, %v1121_v24 }
 0x16b   :  { %v690_v9 = vadd.f32 %v1123_v13, %v582_v35 }
 0x180   :  { %v1156_v41 = vpop.f32.mrb[4].mxu0 }
 0x181   :  { %v1157_v34 = vpop.f32.mrb[5].mxu0 }
 0x182   :  { %v1158_v29 = vadd.f32 %v1157_v34, %v1156_v41 }
 0x184   :  { %v858_v57 = vadd.f32 %v1158_v29, %v690_v9 }
 0x187   :  { %v1191_v59 = vpop.f32.mrb[4].mxu1 }
 0x188   :  { %v1192_v28 = vpop.f32.mrb[5].mxu1 }
 0x189   :  { %v1193_v38 = vadd.f32 %v1192_v28, %v1191_v59 }
 0x18b   :  { %v962_v52 = vadd.f32 %v1193_v38, %v858_v57 }
 0x18d   :  { %965 = vst [vmem:[#allocation8] sm:$0x3] %v962_v52 }
 0x18e   :  { %1469 = shalt.err (!%p1466_p0)
}
 0x18f   :  { %s1470_s26 = scalar_lea.hbm %s1963_s3, 32 }
 0x190   :  { %p1471_p1 = scmp.ne.s32.totalorder %s1963_s3, %s1470_s26  ;;  %p1474_p2 = scmp.lt.u32.totalorder %s1470_s26, %s1963_s3 }
 0x192   :  { %p1476_p3 = pnand %p1474_p2, %p1471_p1 }
 0x194   :  { %1479 = shalt.err (!%p1476_p3)
}
 0x195   :  { %975 = dma.vmem_to_hbm [thread:$0]  %s973_s22, 32, %s1963_s3, [#allocation4]  }
 0x196   :  { %1484 = dma.done.wait [#allocation4], 32  }
 0x197   :  { %1485 = vsyncadd [#allocation4], 4294967264 }
 0x198   :  { %979 = vsyncpa [#allocation3], 1 }
 0x199   :  { %980 = vsyncpa [#allocation6], 1 }
 0x19a   :  { %981 = vsyncpa [#allocation4], 1 }

</bundles_post_ra>
